<compile_context>
chip_gen: v7x
topology: tpu7x:2x2x1
jax: 0.10.0
libtpu: 0.0.40
codegen_flags: <defaults>
</compile_context>

<pallas_src>
import functools

import jax
import jax.numpy as jnp
from jax.experimental import pallas as pl
from jax.experimental.pallas import tpu as pltpu

_LANE = 128
_SUBLANE = 8


def _vmem_capacity_bytes():
    try:
        return int(pltpu.get_tpu_info().vmem_capacity_bytes)
    except Exception:
        # Conservative fallback = v7x per-TensorCore VMEM.
        return 64 * 1024 * 1024


# ---------------------------------------------------------------------------
# Small-image path: several batch elements per grid step.
# ---------------------------------------------------------------------------
def _dice_batch_kernel(x_ref, gt_ref, out_ref, *, hw):
    # x_ref  : (B_TILE, C, R, 128)   logits
    # gt_ref : (B_TILE, R, 128)      labels
    # out_ref: (B_TILE, 8, 128)      per-batch dice term (broadcast)
    b_tile, num_ch, r, lanes = x_ref.shape
    need_mask = (r * lanes) != hw
    if need_mask:
        row = jax.lax.broadcasted_iota(jnp.int32, (r, lanes), 0)
        lane = jax.lax.broadcasted_iota(jnp.int32, (r, lanes), 1)
        valid = (row * lanes + lane) < hw

    for b in range(b_tile):
        # argmax over channels, first-occurrence-wins (matches torch.argmax):
        # strict '>' so the earliest channel keeps ties.
        best = x_ref[b, 0]
        pred = jnp.zeros((r, lanes), jnp.float32)
        for c in range(1, num_ch):
            xc = x_ref[b, c]
            better = xc > best
            best = jnp.where(better, xc, best)
            pred = jnp.where(better, jnp.float32(c), pred)

        gt = gt_ref[b].astype(jnp.float32)
        if need_mask:
            pred = jnp.where(valid, pred, 0.0)
            gt = jnp.where(valid, gt, 0.0)

        inter = jnp.sum(pred * gt)
        psum = jnp.sum(pred + gt)
        dice = 1.0 - (2.0 * inter + 1.0) / (psum + 1.0)
        out_ref[b] = jnp.full((out_ref.shape[1], out_ref.shape[2]), dice,
                              jnp.float32)


# ---------------------------------------------------------------------------
# Large-image path: one batch element per grid row, spatial tiles accumulated.
# ---------------------------------------------------------------------------
def _dice_spatial_kernel(x_ref, gt_ref, out_ref, acc_inter_ref, acc_sum_ref,
                         *, hw, masked):
    # x_ref  : (C, R_TILE, 128) logits tile for one batch element
    # gt_ref : (R_TILE, 128)    labels tile
    # out_ref: (1, 8, 128)      per-batch output block
    # acc_*  : VMEM (R_TILE, 128) f32 elementwise accumulators
    s = pl.program_id(1)
    num_ch, r_tile, lanes = x_ref.shape

    @pl.when(s == 0)
    def _init():
        acc_inter_ref[...] = jnp.zeros_like(acc_inter_ref)
        acc_sum_ref[...] = jnp.zeros_like(acc_sum_ref)

    best = x_ref[0]
    pred = jnp.zeros((r_tile, lanes), jnp.float32)
    for c in range(1, num_ch):
        xc = x_ref[c]
        better = xc > best
        best = jnp.where(better, xc, best)
        pred = jnp.where(better, jnp.float32(c), pred)

    gt = gt_ref[...].astype(jnp.float32)

    if masked:
        # Zero both pred and gt on the ragged / lane-padded tail so DMA'd
        # garbage or pad never enters the sums.
        row = jax.lax.broadcasted_iota(jnp.int32, (r_tile, lanes), 0)
        lane = jax.lax.broadcasted_iota(jnp.int32, (r_tile, lanes), 1)
        flat = (s * r_tile + row) * lanes + lane
        valid = flat < hw
        pred = jnp.where(valid, pred, 0.0)
        gt = jnp.where(valid, gt, 0.0)

    # VPU-only accumulation; no per-step cross-lane reduction.
    acc_inter_ref[...] += pred * gt
    acc_sum_ref[...] += pred + gt

    @pl.when(s == pl.num_programs(1) - 1)
    def _finalize():
        inter = jnp.sum(acc_inter_ref[...])
        psum = jnp.sum(acc_sum_ref[...])
        dice = 1.0 - (2.0 * inter + 1.0) / (psum + 1.0)
        out_ref[...] = jnp.full(out_ref.shape, dice, jnp.float32)


# ---------------------------------------------------------------------------
# Wrapper
# ---------------------------------------------------------------------------
def dice_loss(inputs, ground_truth, eps=1e-6):
    """inputs: (N, C, H, W); ground_truth: (N, H, W). Returns scalar f32 loss."""
    # TODO(synk): `eps` is accepted but unused -- the reference forward adds a
    # fixed +1.0 smoothing term, not eps; kept in the signature for parity.
    N, C, H, W = inputs.shape
    hw = H * W
    x_isz = jnp.dtype(inputs.dtype).itemsize
    g_isz = jnp.dtype(ground_truth.dtype).itemsize

    # Generation-aware VMEM sizing.
    vmem = _vmem_capacity_bytes()
    budget = int(vmem * 0.30)                       # double-buffered inputs
    vmem_limit = min(int(vmem * 0.50), 96 * 1024 * 1024)

    rows = pl.cdiv(hw, _LANE)        # 128-lane rows per image
    hw128 = rows * _LANE

    # Lane-dense layout; keep native dtypes (no upcast -> fewer HBM bytes).
    x = inputs.reshape(N, C, hw)
    g = ground_truth.reshape(N, hw)
    if hw128 != hw:
        # Only the <=127-element lane remainder is padded; the tail is also
        # masked in-kernel, so pad contents never affect the result.
        x = jnp.pad(x, ((0, 0), (0, 0), (0, hw128 - hw)))
        g = jnp.pad(g, ((0, 0), (0, hw128 - hw)))
    x = x.reshape(N, C, rows, _LANE)
    g = g.reshape(N, rows, _LANE)

    per_batch_bytes = (C * x_isz + g_isz) * rows * _LANE

    if rows <= 512 and 2 * per_batch_bytes <= budget:
        # ---------------- small-image path: batch-blocked -------------------
        b_tile = max(1, min(N, 32, budget // (2 * per_batch_bytes)))
        n_pad = pl.cdiv(N, b_tile) * b_tile
        if n_pad != N:
            x = jnp.pad(x, ((0, n_pad - N), (0, 0), (0, 0), (0, 0)))
            g = jnp.pad(g, ((0, n_pad - N), (0, 0), (0, 0)))

        kernel = functools.partial(_dice_batch_kernel, hw=hw)
        per_batch = pl.pallas_call(
            kernel,
            out_shape=jax.ShapeDtypeStruct((n_pad, _SUBLANE, _LANE),
                                           jnp.float32),
            grid_spec=pltpu.PrefetchScalarGridSpec(
                num_scalar_prefetch=0,
                grid=(n_pad // b_tile,),
                in_specs=[
                    pl.BlockSpec((b_tile, C, rows, _LANE),
                                 lambda i: (i, 0, 0, 0)),
                    pl.BlockSpec((b_tile, rows, _LANE),
                                 lambda i: (i, 0, 0)),
                ],
                out_specs=pl.BlockSpec((b_tile, _SUBLANE, _LANE),
                                       lambda i: (i, 0, 0)),
            ),
            compiler_params=pltpu.CompilerParams(
                dimension_semantics=("parallel",),
                vmem_limit_bytes=vmem_limit,
            ),
        )(x, g)
        return jnp.mean(per_batch[:N, 0, 0])

    # ------------------ large-image path: spatial accumulation --------------
    # Per-row VMEM cost: double-buffered x and gt windows + the two
    # single-buffered f32 accumulators.
    per_row_bytes = 2 * (C * x_isz + g_isz) * _LANE + 2 * _LANE * 4
    max_rows = max(16, ((budget // per_row_bytes) // 16) * 16)
    if max_rows >= rows:
        rows_tile = rows
        n_spatial = 1
    else:
        rows_tile = max_rows
        n_spatial = pl.cdiv(rows, rows_tile)
    # Mask only when the tiling overshoots the valid element count (ragged
    # last block and/or lane padding).
    masked = (n_spatial * rows_tile * _LANE) != hw

    # TODO(synk): on v7x (2 TensorCores) with N==1 or odd N, a second
    # "parallel" grid axis splitting the spatial reduction (emitting partial
    # sums combined in the wrapper) would keep both cores busy.
    kernel = functools.partial(_dice_spatial_kernel, hw=hw, masked=masked)
    per_batch = pl.pallas_call(
        kernel,
        out_shape=jax.ShapeDtypeStruct((N, _SUBLANE, _LANE), jnp.float32),
        grid_spec=pltpu.PrefetchScalarGridSpec(
            num_scalar_prefetch=0,
            grid=(N, n_spatial),
            in_specs=[
                pl.BlockSpec((pl.Squeezed(), C, rows_tile, _LANE),
                             lambda b, s: (b, 0, s, 0)),
                pl.BlockSpec((pl.Squeezed(), rows_tile, _LANE),
                             lambda b, s: (b, s, 0)),
            ],
            out_specs=pl.BlockSpec((1, _SUBLANE, _LANE),
                                   lambda b, s: (b, 0, 0)),
            scratch_shapes=[
                pltpu.VMEM((rows_tile, _LANE), jnp.float32),
                pltpu.VMEM((rows_tile, _LANE), jnp.float32),
            ],
        ),
        compiler_params=pltpu.CompilerParams(
            dimension_semantics=("parallel", "arbitrary"),
            vmem_limit_bytes=vmem_limit,
        ),
    )(x, g)
    return jnp.mean(per_batch[:, 0, 0])


def _reference(inputs, ground_truth):
    # Pure-JAX reference mirroring the PyTorch forward.
    pred = jnp.argmax(inputs, axis=1).astype(jnp.float32)
    gt = ground_truth.astype(jnp.float32)
    num = 2.0 * jnp.sum(pred * gt, axis=(1, 2)) + 1.0
    den = jnp.sum(pred, axis=(1, 2)) + jnp.sum(gt, axis=(1, 2)) + 1.0
    return jnp.mean(1.0 - num / den)


if __name__ == "__main__":
    key = jax.random.PRNGKey(0)
    k1, k2 = jax.random.split(key)
    N, C, H, W = 2, 4, 16, 16
    inputs = jax.random.normal(k1, (N, C, H, W), dtype=jnp.float32)
    # Integer-valued ground-truth labels in [0, C), stored as float.
    ground_truth = jax.random.randint(k2, (N, H, W), 0, C).astype(jnp.float32)

    loss = jax.block_until_ready(dice_loss(inputs, ground_truth))
    ref = jax.block_until_ready(_reference(inputs, ground_truth))

    assert jnp.allclose(loss, ref, atol=1e-5, rtol=1e-5), (loss, ref)
    print("KERNEL_OK")
</pallas_src>

<mosaic_0001>
module attributes {stable_mosaic.version = 11 : i64} {
  func.func @_dice_batch_kernel(%arg0: i32, %arg1: memref<2x4x2x128xf32, #tpu.memory_space<vmem>>, %arg2: memref<2x2x128xf32, #tpu.memory_space<vmem>>, %arg3: memref<2x8x128xf32, #tpu.memory_space<vmem>>) attributes {dimension_semantics = [#tpu.dimension_semantics<parallel>], iteration_bounds = array<i64: 1>, scalar_prefetch = 0 : i64, scratch_operands = 0 : i64, tpu.core_type = #tpu.core_type<tc>, window_params = [{transform_indices = @transform_0, window_bounds = array<i64: 2, 4, 2, 128>}, {transform_indices = @transform_1, window_bounds = array<i64: 2, 2, 128>}, {transform_indices = @transform_2, window_bounds = array<i64: 2, 8, 128>}]} {
    %c0 = arith.constant 0 : index
    %c0_0 = arith.constant 0 : index
    %c0_1 = arith.constant 0 : index
    %c0_2 = arith.constant 0 : index
    %0 = vector.load %arg1[%c0, %c0_0, %c0_1, %c0_2] : memref<2x4x2x128xf32, #tpu.memory_space<vmem>>, vector<1x1x2x128xf32>
    %1 = vector.shape_cast %0 : vector<1x1x2x128xf32> to vector<2x128xf32>
    %cst = arith.constant 0.000000e+00 : f32
    %2 = vector.broadcast %cst : f32 to vector<2x128xf32>
    %c0_3 = arith.constant 0 : index
    %c1 = arith.constant 1 : index
    %c0_4 = arith.constant 0 : index
    %c0_5 = arith.constant 0 : index
    %3 = vector.load %arg1[%c0_3, %c1, %c0_4, %c0_5] : memref<2x4x2x128xf32, #tpu.memory_space<vmem>>, vector<1x1x2x128xf32>
    %4 = vector.shape_cast %3 : vector<1x1x2x128xf32> to vector<2x128xf32>
    %5 = arith.cmpf ogt, %4, %1 : vector<2x128xf32>
    %6 = arith.select %5, %4, %1 : vector<2x128xi1>, vector<2x128xf32>
    %cst_6 = arith.constant 1.000000e+00 : f32
    %7 = vector.broadcast %cst_6 : f32 to vector<2x128xf32>
    %8 = arith.select %5, %7, %2 : vector<2x128xi1>, vector<2x128xf32>
    %c0_7 = arith.constant 0 : index
    %c2 = arith.constant 2 : index
    %c0_8 = arith.constant 0 : index
    %c0_9 = arith.constant 0 : index
    %9 = vector.load %arg1[%c0_7, %c2, %c0_8, %c0_9] : memref<2x4x2x128xf32, #tpu.memory_space<vmem>>, vector<1x1x2x128xf32>
    %10 = vector.shape_cast %9 : vector<1x1x2x128xf32> to vector<2x128xf32>
    %11 = arith.cmpf ogt, %10, %6 : vector<2x128xf32>
    %12 = arith.select %11, %10, %6 : vector<2x128xi1>, vector<2x128xf32>
    %cst_10 = arith.constant 2.000000e+00 : f32
    %13 = vector.broadcast %cst_10 : f32 to vector<2x128xf32>
    %14 = arith.select %11, %13, %8 : vector<2x128xi1>, vector<2x128xf32>
    %c0_11 = arith.constant 0 : index
    %c3 = arith.constant 3 : index
    %c0_12 = arith.constant 0 : index
    %c0_13 = arith.constant 0 : index
    %15 = vector.load %arg1[%c0_11, %c3, %c0_12, %c0_13] : memref<2x4x2x128xf32, #tpu.memory_space<vmem>>, vector<1x1x2x128xf32>
    %16 = vector.shape_cast %15 : vector<1x1x2x128xf32> to vector<2x128xf32>
    %17 = arith.cmpf ogt, %16, %12 : vector<2x128xf32>
    %cst_14 = arith.constant 3.000000e+00 : f32
    %18 = vector.broadcast %cst_14 : f32 to vector<2x128xf32>
    %19 = arith.select %17, %18, %14 : vector<2x128xi1>, vector<2x128xf32>
    %c0_15 = arith.constant 0 : index
    %c0_16 = arith.constant 0 : index
    %c0_17 = arith.constant 0 : index
    %20 = vector.load %arg2[%c0_15, %c0_16, %c0_17] : memref<2x2x128xf32, #tpu.memory_space<vmem>>, vector<1x2x128xf32>
    %21 = vector.shape_cast %20 : vector<1x2x128xf32> to vector<2x128xf32>
    %22 = arith.mulf %19, %21 : vector<2x128xf32>
    %23 = vector.shape_cast %22 : vector<2x128xf32> to vector<1x2x128xf32>
    %cst_18 = arith.constant dense<0.000000e+00> : vector<1xf32>
    %24 = vector.multi_reduction <add>, %23, %cst_18 [1, 2] : vector<1x2x128xf32> to vector<1xf32>
    %25 = vector.shape_cast %24 : vector<1xf32> to vector<1x1x1xf32>
    %26 = vector.extract %25[0, 0, 0] : f32 from vector<1x1x1xf32>
    %27 = arith.addf %19, %21 : vector<2x128xf32>
    %28 = vector.shape_cast %27 : vector<2x128xf32> to vector<1x2x128xf32>
    %cst_19 = arith.constant dense<0.000000e+00> : vector<1xf32>
    %29 = vector.multi_reduction <add>, %28, %cst_19 [1, 2] : vector<1x2x128xf32> to vector<1xf32>
    %30 = vector.shape_cast %29 : vector<1xf32> to vector<1x1x1xf32>
    %31 = vector.extract %30[0, 0, 0] : f32 from vector<1x1x1xf32>
    %cst_20 = arith.constant 2.000000e+00 : f32
    %32 = arith.mulf %cst_20, %26 : f32
    %cst_21 = arith.constant 1.000000e+00 : f32
    %33 = arith.addf %32, %cst_21 : f32
    %cst_22 = arith.constant 1.000000e+00 : f32
    %34 = arith.addf %31, %cst_22 : f32
    %35 = arith.divf %33, %34 : f32
    %cst_23 = arith.constant 1.000000e+00 : f32
    %36 = arith.subf %cst_23, %35 : f32
    %37 = vector.broadcast %36 : f32 to vector<8x128xf32>
    %c0_24 = arith.constant 0 : index
    %c0_25 = arith.constant 0 : index
    %c0_26 = arith.constant 0 : index
    %38 = vector.load %arg3[%c0_24, %c0_25, %c0_26] : memref<2x8x128xf32, #tpu.memory_space<vmem>>, vector<1x8x128xf32>
    %39 = vector.shape_cast %38 : vector<1x8x128xf32> to vector<8x128xf32>
    %40 = vector.shape_cast %37 : vector<8x128xf32> to vector<1x8x128xf32>
    tpu.vector_store %arg3[%c0_24, %c0_25, %c0_26], %40 {strides = array<i32>} : memref<2x8x128xf32, #tpu.memory_space<vmem>>, vector<1x8x128xf32>,
    %c1_27 = arith.constant 1 : index
    %c0_28 = arith.constant 0 : index
    %c0_29 = arith.constant 0 : index
    %c0_30 = arith.constant 0 : index
    %41 = vector.load %arg1[%c1_27, %c0_28, %c0_29, %c0_30] : memref<2x4x2x128xf32, #tpu.memory_space<vmem>>, vector<1x1x2x128xf32>
    %42 = vector.shape_cast %41 : vector<1x1x2x128xf32> to vector<2x128xf32>
    %cst_31 = arith.constant 0.000000e+00 : f32
    %43 = vector.broadcast %cst_31 : f32 to vector<2x128xf32>
    %c1_32 = arith.constant 1 : index
    %c1_33 = arith.constant 1 : index
    %c0_34 = arith.constant 0 : index
    %c0_35 = arith.constant 0 : index
    %44 = vector.load %arg1[%c1_32, %c1_33, %c0_34, %c0_35] : memref<2x4x2x128xf32, #tpu.memory_space<vmem>>, vector<1x1x2x128xf32>
    %45 = vector.shape_cast %44 : vector<1x1x2x128xf32> to vector<2x128xf32>
    %46 = arith.cmpf ogt, %45, %42 : vector<2x128xf32>
    %47 = arith.select %46, %45, %42 : vector<2x128xi1>, vector<2x128xf32>
    %cst_36 = arith.constant 1.000000e+00 : f32
    %48 = vector.broadcast %cst_36 : f32 to vector<2x128xf32>
    %49 = arith.select %46, %48, %43 : vector<2x128xi1>, vector<2x128xf32>
    %c1_37 = arith.constant 1 : index
    %c2_38 = arith.constant 2 : index
    %c0_39 = arith.constant 0 : index
    %c0_40 = arith.constant 0 : index
    %50 = vector.load %arg1[%c1_37, %c2_38, %c0_39, %c0_40] : memref<2x4x2x128xf32, #tpu.memory_space<vmem>>, vector<1x1x2x128xf32>
    %51 = vector.shape_cast %50 : vector<1x1x2x128xf32> to vector<2x128xf32>
    %52 = arith.cmpf ogt, %51, %47 : vector<2x128xf32>
    %53 = arith.select %52, %51, %47 : vector<2x128xi1>, vector<2x128xf32>
    %cst_41 = arith.constant 2.000000e+00 : f32
    %54 = vector.broadcast %cst_41 : f32 to vector<2x128xf32>
    %55 = arith.select %52, %54, %49 : vector<2x128xi1>, vector<2x128xf32>
    %c1_42 = arith.constant 1 : index
    %c3_43 = arith.constant 3 : index
    %c0_44 = arith.constant 0 : index
    %c0_45 = arith.constant 0 : index
    %56 = vector.load %arg1[%c1_42, %c3_43, %c0_44, %c0_45] : memref<2x4x2x128xf32, #tpu.memory_space<vmem>>, vector<1x1x2x128xf32>
    %57 = vector.shape_cast %56 : vector<1x1x2x128xf32> to vector<2x128xf32>
    %58 = arith.cmpf ogt, %57, %53 : vector<2x128xf32>
    %cst_46 = arith.constant 3.000000e+00 : f32
    %59 = vector.broadcast %cst_46 : f32 to vector<2x128xf32>
    %60 = arith.select %58, %59, %55 : vector<2x128xi1>, vector<2x128xf32>
    %c1_47 = arith.constant 1 : index
    %c0_48 = arith.constant 0 : index
    %c0_49 = arith.constant 0 : index
    %61 = vector.load %arg2[%c1_47, %c0_48, %c0_49] : memref<2x2x128xf32, #tpu.memory_space<vmem>>, vector<1x2x128xf32>
    %62 = vector.shape_cast %61 : vector<1x2x128xf32> to vector<2x128xf32>
    %63 = arith.mulf %60, %62 : vector<2x128xf32>
    %64 = vector.shape_cast %63 : vector<2x128xf32> to vector<1x2x128xf32>
    %cst_50 = arith.constant dense<0.000000e+00> : vector<1xf32>
    %65 = vector.multi_reduction <add>, %64, %cst_50 [1, 2] : vector<1x2x128xf32> to vector<1xf32>
    %66 = vector.shape_cast %65 : vector<1xf32> to vector<1x1x1xf32>
    %67 = vector.extract %66[0, 0, 0] : f32 from vector<1x1x1xf32>
    %68 = arith.addf %60, %62 : vector<2x128xf32>
    %69 = vector.shape_cast %68 : vector<2x128xf32> to vector<1x2x128xf32>
    %cst_51 = arith.constant dense<0.000000e+00> : vector<1xf32>
    %70 = vector.multi_reduction <add>, %69, %cst_51 [1, 2] : vector<1x2x128xf32> to vector<1xf32>
    %71 = vector.shape_cast %70 : vector<1xf32> to vector<1x1x1xf32>
    %72 = vector.extract %71[0, 0, 0] : f32 from vector<1x1x1xf32>
    %cst_52 = arith.constant 2.000000e+00 : f32
    %73 = arith.mulf %cst_52, %67 : f32
    %cst_53 = arith.constant 1.000000e+00 : f32
    %74 = arith.addf %73, %cst_53 : f32
    %cst_54 = arith.constant 1.000000e+00 : f32
    %75 = arith.addf %72, %cst_54 : f32
    %76 = arith.divf %74, %75 : f32
    %cst_55 = arith.constant 1.000000e+00 : f32
    %77 = arith.subf %cst_55, %76 : f32
    %78 = vector.broadcast %77 : f32 to vector<8x128xf32>
    %c1_56 = arith.constant 1 : index
    %c0_57 = arith.constant 0 : index
    %c0_58 = arith.constant 0 : index
    %79 = vector.load %arg3[%c1_56, %c0_57, %c0_58] : memref<2x8x128xf32, #tpu.memory_space<vmem>>, vector<1x8x128xf32>
    %80 = vector.shape_cast %79 : vector<1x8x128xf32> to vector<8x128xf32>
    %81 = vector.shape_cast %78 : vector<8x128xf32> to vector<1x8x128xf32>
    tpu.vector_store %arg3[%c1_56, %c0_57, %c0_58], %81 {strides = array<i32>} : memref<2x8x128xf32, #tpu.memory_space<vmem>>, vector<1x8x128xf32>,
    return
  }
  func.func @transform_0(%arg0: i32) -> (i32, i32, i32, i32) {
    %c0_i32 = arith.constant 0 : i32
    %c0_i32_0 = arith.constant 0 : i32
    %c0_i32_1 = arith.constant 0 : i32
    %c0_i32_2 = arith.constant 0 : i32
    return %arg0, %c0_i32, %c0_i32_0, %c0_i32_1 : i32, i32, i32, i32
  }
  func.func @transform_1(%arg0: i32) -> (i32, i32, i32) {
    %c0_i32 = arith.constant 0 : i32
    %c0_i32_0 = arith.constant 0 : i32
    %c0_i32_1 = arith.constant 0 : i32
    return %arg0, %c0_i32, %c0_i32_0 : i32, i32, i32
  }
  func.func @transform_2(%arg0: i32) -> (i32, i32, i32) {
    %c0_i32 = arith.constant 0 : i32
    %c0_i32_0 = arith.constant 0 : i32
    %c0_i32_1 = arith.constant 0 : i32
    return %arg0, %c0_i32, %c0_i32_0 : i32, i32, i32
  }
}

</mosaic_0001>

<bundles_post_ra>
// kernel: tpu_custom_call.1
= control target key start
LH: loop header
LB: loop body
LE: loop exit
PB: predicated region body
PF: predicated region fallthrough
CT: control target
= control target key end

     0   :  { %7 = vsyncpa [#allocation3], 0  ;;  %s313_s0 = inlined_call_operand.hbm [shape: f32[2,4,2,128], index: 0, kind: input, shape index: {}]   ;;  %s314_s1 = inlined_call_operand.hbm [shape: f32[2,2,128], index: 1, kind: input, shape index: {}]   ;;  %s315_s2 = inlined_call_operand.hbm [shape: f32[2,8,128], index: 2, kind: output, shape index: {}]  }
   0x1   :  { %8 = vsyncpa [#allocation6], 0 }
   0x2   :  { %9 = vsyncpa [#allocation4], 0  ;;  %s254_s9 = smov [#allocation2]   ;;  %s182_s13 = scalar_lea.hbm %s313_s0, 256 }
   0x3   :  { %s15_s10 = sshll.u32 %s254_s9, 4  ;;  %p183_p0 = scmp.ne.s32.totalorder %s313_s0, %s182_s13  ;;  %s16_s10 = int_to_ptr.vmem [resolvable:$true] %s15_s10 }
   0x4   :  { %p186_p1 = scmp.lt.u32.totalorder %s182_s13, %s313_s0 }
   0x6   :  { %p188_p2 = pnand %p186_p1, %p183_p0 }
   0x8   :  { %191 = shalt.err (!%p188_p2)
}
   0x9   :  { %s192_s18 = scalar_lea.vmem %s16_s10, 256  ;;  %p197_p4 = scmp.lt.s32.totalorder %s16_s10, %s16_s10 }
   0xa   :  { %p193_p3 = scmp.ne.s32.totalorder %s16_s10, %s192_s18  ;;  %p198_p5 = scmp.lt.s32.totalorder %s192_s18, %s192_s18 }
   0xc   :  { %p199_p6 = por %p198_p5, %p197_p4 }
   0xe   :  { %p200_p7 = pnand %p199_p6, %p193_p3 }
  0x10   :  { %203 = shalt.err (!%p200_p7)
}
  0x11   :  { %s255_s19 = smov 32   ;;  %s256_s20 = smov 2  }
  0x12   :  { %21 = dma.hbm_to_vmem [thread:$0]  %s313_s0, 256, %s16_s10, [#allocation3], %s255_s19, %s255_s19, %s256_s20  }
  0x13   :  { %s257_s23 = smov [#allocation5]   ;;  %s204_s27 = scalar_lea.hbm %s314_s1, 64 }
  0x14   :  { %s27_s24 = sshll.u32 %s257_s23, 4  ;;  %p205_p8 = scmp.ne.s32.totalorder %s314_s1, %s204_s27  ;;  %s28_s24 = int_to_ptr.vmem [resolvable:$true] %s27_s24 }
  0x15   :  { %p208_p9 = scmp.lt.u32.totalorder %s204_s27, %s314_s1 }
  0x17   :  { %p210_p10 = pnand %p208_p9, %p205_p8 }
  0x19   :  { %213 = shalt.err (!%p210_p10)
}
  0x1a   :  { %s214_s4 = scalar_lea.vmem %s28_s24, 64  ;;  %p219_p12 = scmp.lt.s32.totalorder %s28_s24, %s28_s24 }
  0x1b   :  { %p215_p11 = scmp.ne.s32.totalorder %s28_s24, %s214_s4  ;;  %p220_p13 = scmp.lt.s32.totalorder %s214_s4, %s214_s4 }
  0x1d   :  { %p221_p0 = por %p220_p13, %p219_p12 }
  0x1f   :  { %p222_p1 = pnand %p221_p0, %p215_p11 }
  0x21   :  { %225 = shalt.err (!%p222_p1)
}
  0x22   :  { %33 = dma.hbm_to_vmem [thread:$0]  %s314_s1, 64, %s28_s24, [#allocation6], %s255_s19, %s255_s19, %s256_s20  }
  0x23   :  { %248 = dma.done.wait [#allocation3], 256  }
  0x24   :  { %249 = vsyncadd [#allocation3], 4294967040 }
  0x25   :  { %250 = dma.done.wait [#allocation6], 64  }
  0x26   :  { %251 = vsyncadd [#allocation6], 4294967232  ;;  %v40_v0 = vld [vmem:[#allocation2] sm:$0x3]  ;;  %v42_v1 = vld [vmem:[#allocation2 + $0x2] sm:$0x3] }
  0x27   :  { %v47_v2 = vld [vmem:[#allocation2 + $0x4] sm:$0x3]  ;;  %vm43_vm0 = vcmp.gt.f32.partialorder %v42_v1, %v40_v0  ;;  %v52_v3 = vld [vmem:[#allocation2 + $0x6] sm:$0x3]  ;;  %v90_v4 = vld [vmem:[#allocation2 + $0x8] sm:$0x3] }
  0x28   :  { %v44_v5 = vsel %vm43_vm0, %v42_v1, %v40_v0  ;;  %v258_v6 = vmov 0.0   ;;  %v92_v8 = vld [vmem:[#allocation2 + $0xa] sm:$0x3]  ;;  %v97_v9 = vld [vmem:[#allocation2 + $0xc] sm:$0x3]  ;;  %vm57_vm5 = vcmask 1041408  }
  0x29   :  { %v45_v7 = vsel %vm43_vm0, 1.0, %v258_v6  ;;  %vm48_vm1 = vcmp.gt.f32.partialorder %v47_v2, %v44_v5  ;;  %vm93_vm2 = vcmp.gt.f32.partialorder %v92_v8, %v90_v4  ;;  %v55_v12 = vld [vmem:[#allocation5] sm:$0x3]  ;;  %v102_v15 = vld [vmem:[#allocation2 + $0xe] sm:$0x3]  ;;  %s259_s19 = smov [#allocation7]  }
  0x2a   :  { %v49_v10 = vsel %vm48_vm1, %v47_v2, %v44_v5  ;;  %v50_v11 = vsel %vm48_vm1, 2.0, %v45_v7  ;;  %v94_v13 = vsel %vm93_vm2, %v92_v8, %v90_v4  ;;  %v95_v14 = vsel %vm93_vm2, 1.0, %v258_v6  ;;  %v106_v19 = vld [vmem:[#allocation5 + $0x2] sm:$0x3]  ;;  %s145_s20 = sshll.u32 %s259_s19, 4  ;;  %s146_s20 = int_to_ptr.vmem [resolvable:$true] %s145_s20 }
  0x2b   :  { %vm53_vm3 = vcmp.gt.f32.partialorder %v52_v3, %v49_v10  ;;  %vm98_vm4 = vcmp.gt.f32.partialorder %v97_v9, %v94_v13  ;;  %s226_s23 = scalar_lea.vmem %s146_s20, 256  ;;  %p231_p3 = scmp.lt.s32.totalorder %s146_s20, %s146_s20 }
  0x2c   :  { %v54_v16 = vsel %vm53_vm3, 3.0, %v50_v11  ;;  %v99_v17 = vsel %vm98_vm4, %v97_v9, %v94_v13  ;;  %v100_v18 = vsel %vm98_vm4, 2.0, %v95_v14  ;;  %p227_p2 = scmp.ne.s32.totalorder %s146_s20, %s226_s23  ;;  %p232_p4 = scmp.lt.s32.totalorder %s226_s23, %s226_s23 }
  0x2d   :  { %v56_v20 = vmul.f32 %v55_v12, %v54_v16  ;;  %v68_v21 = vadd.f32 %v55_v12, %v54_v16  ;;  %vm103_vm6 = vcmp.gt.f32.partialorder %v102_v15, %v99_v17 }
  0x2e   :  { %v104_v22 = vsel %vm103_vm6, 3.0, %v100_v18  ;;  %p233_p5 = por %p232_p4, %p231_p3 }
  0x2f   :  { %v58_v23 = vsel %vm57_vm5, %v56_v20, 0.0  ;;  %v107_v24 = vmul.f32 %v106_v19, %v104_v22  ;;  %v118_v25 = vadd.f32 %v106_v19, %v104_v22  ;;  %v69_v26 = vsel %vm57_vm5, %v68_v21, 0.0 }
  0x30   :  { %59 = vadd.xlane.f32.xlu0 %v58_v23  ;;  %p234_p6 = pnand %p233_p5, %p227_p2 }
  0x31   :  { %v108_v27 = vsel %vm57_vm5, %v107_v24, 0.0  ;;  %v119_v28 = vsel %vm57_vm5, %v118_v25, 0.0 }
  0x32   :  { %109 = vadd.xlane.f32.xlu1 %v108_v27 }
  0x34   :  { %70 = vadd.xlane.f32.xlu0 %v69_v26 }
  0x36   :  { %120 = vadd.xlane.f32.xlu1 %v119_v28 }
  0xbd   :  { %v60_v29 = vpop.xlane.xlu0 %59 }
  0xbe   :  { %v61_v30 = vrot.slane %v60_v29, 4 }
  0xbf   :  { %v110_v43 = vpop.xlane.xlu1 %109 }
  0xc0   :  { %v62_v31 = vadd.f32 %v61_v30, %v60_v29  ;;  %v111_v45 = vrot.slane %v110_v43, 4 }
  0xc1   :  { %v71_v32 = vpop.xlane.xlu0 %70 }
  0xc2   :  { %v63_v33 = vrot.slane %v62_v31, 2  ;;  %v72_v34 = vrot.slane %v71_v32, 4  ;;  %v112_v47 = vadd.f32 %v111_v45, %v110_v43 }
  0xc3   :  { %v121_v44 = vpop.xlane.xlu1 %120 }
  0xc4   :  { %v73_v35 = vadd.f32 %v72_v34, %v71_v32  ;;  %v64_v36 = vadd.f32 %v63_v33, %v62_v31  ;;  %v122_v46 = vrot.slane %v121_v44, 4  ;;  %v113_v49 = vrot.slane %v112_v47, 2 }
  0xc6   :  { %v74_v37 = vrot.slane %v73_v35, 2  ;;  %v65_v38 = vrot.slane %v64_v36, 1  ;;  %v123_v48 = vadd.f32 %v122_v46, %v121_v44  ;;  %v114_v52 = vadd.f32 %v113_v49, %v112_v47 }
  0xc8   :  { %v75_v39 = vadd.f32 %v74_v37, %v73_v35  ;;  %v66_v40 = vadd.f32 %v65_v38, %v64_v36  ;;  %v124_v50 = vrot.slane %v123_v48, 2  ;;  %v115_v54 = vrot.slane %v114_v52, 1 }
  0xca   :  { %158 = vpush %v66_v40  ;;  %v76_v41 = vrot.slane %v75_v39, 1  ;;  %v125_v53 = vadd.f32 %v124_v50, %v123_v48  ;;  %v116_v57 = vadd.f32 %v115_v54, %v114_v52 }
  0xcc   :  { %v77_v42 = vadd.f32 %v76_v41, %v75_v39  ;;  %v126_v55 = vrot.slane %v125_v53, 1 }
  0xce   :  { %160 = vpush %v77_v42  ;;  %v127_v58 = vadd.f32 %v126_v55, %v125_v53 }
  0xfb   :  { %s159_s1 = spop %158 }
  0xfc   :  { %s79_s8 = smul.f32 2.0, %s159_s1 }
  0xfe   :  { %s80_s9 = sadd.f32 1.0, %s79_s8 }
  0xff   :  { %s161_s6 = spop %160 }
 0x100   :  { %s81_s7 = sadd.f32 1.0, %s161_s6 }
 0x102   :  { %v82_v51 = vstv %s81_s7 }
 0x103   :  { %178 = vrcp.f32 %v82_v51 }
 0x10d   :  { %v179_v56 = vpop.eup %178 }
 0x10e   :  { %162 = vpush %v179_v56 }
 0x10f   :  { %164 = vpush %v116_v57 }
 0x110   :  { %166 = vpush %v127_v58 }
 0x13f   :  { %s163_s10 = spop %162 }
 0x140   :  { %s85_s11 = smul.f32 %s163_s10, %s80_s9  ;;  %s165_s12 = spop %164 }
 0x141   :  { %s167_s13 = spop %166  ;;  %s129_s16 = smul.f32 2.0, %s165_s12 }
 0x142   :  { %s86_s14 = ssub.f32 1.0, %s85_s11 }
 0x143   :  { %s131_s15 = sadd.f32 1.0, %s167_s13 }
 0x144   :  { %v87_v59 = vstv %s86_s14  ;;  %s130_s17 = sadd.f32 1.0, %s129_s16 }
 0x145   :  { %88 = vst [vmem:[#allocation7] sm:$0xff] %v87_v59  ;;  %v132_v60 = vstv %s131_s15 }
 0x146   :  { %180 = vrcp.f32 %v132_v60 }
 0x150   :  { %v181_v61 = vpop.eup %180 }
 0x151   :  { %168 = vpush %v181_v61 }
 0x182   :  { %s169_s18 = spop %168 }
 0x183   :  { %s135_s21 = smul.f32 %s169_s18, %s130_s17 }
 0x185   :  { %s136_s22 = ssub.f32 1.0, %s135_s21 }
 0x187   :  { %v137_v62 = vstv %s136_s22 }
 0x188   :  { %139 = vst [vmem:[#allocation7 + $0x8] sm:$0xff] %v137_v62 }
 0x189   :  { %237 = shalt.err (!%p234_p6)
}
 0x18a   :  { %s238_s26 = scalar_lea.hbm %s315_s2, 256 }
 0x18b   :  { %p239_p7 = scmp.ne.s32.totalorder %s315_s2, %s238_s26  ;;  %p242_p8 = scmp.lt.u32.totalorder %s238_s26, %s315_s2 }
 0x18d   :  { %p244_p9 = pnand %p242_p8, %p239_p7 }
 0x18f   :  { %247 = shalt.err (!%p244_p9)
}
 0x190   :  { %s260_s3 = smov 128   ;;  %s261_s4 = smov 8  }
 0x191   :  { %151 = dma.vmem_to_hbm [thread:$0]  %s146_s20, 256, %s315_s2, [#allocation4], %s260_s3, %s260_s3, %s261_s4  }
 0x192   :  { %252 = dma.done.wait [#allocation4], 256  }
 0x193   :  { %253 = vsyncadd [#allocation4], 4294967040 }
 0x194   :  { %155 = vsyncpa [#allocation3], 1 }
 0x195   :  { %156 = vsyncpa [#allocation6], 1 }
 0x196   :  { %157 = vsyncpa [#allocation4], 1 }

</bundles_post_ra>
